<compile_context>
chip_gen: v7x
topology: tpu7x:2x2x1
jax: 0.10.0
libtpu: 0.0.40
codegen_flags: <defaults>
</compile_context>

<pallas_src>
import jax
import jax.numpy as jnp
from jax.experimental import pallas as pl
from jax.experimental.pallas import tpu as pltpu


def _round_up(x, m):
    return ((x + m - 1) // m) * m


def _batch_tiles(batch):
    tb = 128 if batch >= 128 else _round_up(batch, 8)
    return tb, _round_up(batch, tb)


# ----------------------------------------------------------------------------
# Fused column kernels
# ----------------------------------------------------------------------------
def _column_lateral_kernel(x_ref, w_ref, b_ref, lat_ref, out_ref, act_ref):
    r = pl.program_id(1)

    @pl.when(r == 0)
    def _():
        act_ref[...] = x_ref[...]

    # Effective input: [y_{r-1}, lat_0, ..., lat_{P-1}]  -> single MXU dot.
    act_c = act_ref[...].astype(w_ref.dtype)
    xin = jnp.concatenate([act_c, lat_ref[0]], axis=-1)        # (TB, (P+1)*D)
    acc = jnp.dot(xin, w_ref[0], preferred_element_type=jnp.float32)
    acc = acc + b_ref[0]                                       # ub already folded in
    y = jnp.maximum(acc, 0.0)                                  # f32 VPU epilogue
    out_ref[0] = y.astype(out_ref.dtype)
    act_ref[...] = y                                           # carry to next row


def _column_kernel(x_ref, w_ref, b_ref, out_ref, act_ref):
    r = pl.program_id(1)

    @pl.when(r == 0)
    def _():
        act_ref[...] = x_ref[...]

    acc = jnp.dot(act_ref[...].astype(w_ref.dtype), w_ref[0],
                  preferred_element_type=jnp.float32)
    acc = acc + b_ref[0]
    y = jnp.maximum(acc, 0.0)
    out_ref[0] = y.astype(out_ref.dtype)
    act_ref[...] = y


# ----------------------------------------------------------------------------
# One-time packing (done outside the forward)
# ----------------------------------------------------------------------------
def pack_column_params(params, layer_sizes, num_parents,
                       compute_dtype=jnp.bfloat16):
    """Pad feature dims to 128, stack per-row weights, fuse laterals along K,
    and fold lateral biases into the main bias."""
    num_rows = len(params)
    d_pad = max(_round_up(d, 128) for d in layer_sizes)
    p_lat = num_parents if any(p.get("u") is not None for p in params) else 0
    k_eff = (1 + p_lat) * d_pad

    w_stack = jnp.zeros((num_rows, k_eff, d_pad), compute_dtype)
    b_stack = jnp.zeros((num_rows, 1, d_pad), jnp.float32)
    for r, p in enumerate(params):
        din, dout = layer_sizes[r], layer_sizes[r + 1]
        w_stack = w_stack.at[r, :din, :dout].set(p["w"].astype(compute_dtype))
        b_eff = p["b"]
        if p.get("u") is not None and num_parents > 0:
            b_eff = b_eff + p["ub"].sum(axis=0)          # fold ub_c into bias
            for c in range(num_parents):
                lo = (1 + c) * d_pad
                w_stack = w_stack.at[r, lo:lo + din, :dout].set(
                    p["u"][c].astype(compute_dtype))
        b_stack = b_stack.at[r, 0, :dout].set(b_eff[0])

    return {"w": w_stack, "b": b_stack, "d_pad": d_pad, "k_eff": k_eff,
            "p_lat": p_lat, "num_parents": num_parents,
            "layer_sizes": tuple(layer_sizes), "compute_dtype": compute_dtype}


def pack_laterals(parent_last_outputs, packed, batch):
    """Pack parent columns' lastOutputList into one padded, lane-dense tensor:
    lat_stack[r] = concat_c(parent_c.lastOutputList[r-1]), zero-padded."""
    layer_sizes = packed["layer_sizes"]
    d_pad = packed["d_pad"]
    num_rows = len(layer_sizes) - 1
    num_parents = len(parent_last_outputs)
    _, b_pad = _batch_tiles(batch)
    lat = jnp.zeros((num_rows, b_pad, max(num_parents, 1) * d_pad),
                    packed["compute_dtype"])
    for r in range(1, num_rows):
        dprev = layer_sizes[r]
        for c in range(num_parents):
            lat = lat.at[r, :batch, c * d_pad:c * d_pad + dprev].set(
                parent_last_outputs[c][r - 1].astype(packed["compute_dtype"]))
    return lat


# ----------------------------------------------------------------------------
# Forward
# ----------------------------------------------------------------------------
def prog_column_forward(x, packed, lat_stack=None):
    """Returns (last_output, lastOutputList)."""
    layer_sizes = packed["layer_sizes"]
    num_rows = len(layer_sizes) - 1
    d_pad, k_eff = packed["d_pad"], packed["k_eff"]
    batch, din0 = x.shape
    tb, b_pad = _batch_tiles(batch)

    x_pad = jnp.zeros((b_pad, d_pad), jnp.float32)
    x_pad = x_pad.at[:batch, :din0].set(x.astype(jnp.float32))

    has_lateral = packed["p_lat"] > 0
    if has_lateral and lat_stack is None:
        raise ValueError("column has lateral connections: pass lat_stack "
                         "(built once via pack_laterals).")

    in_specs = [
        pl.BlockSpec((tb, d_pad), lambda i, r: (i, 0)),           # x (row 0 only)
        pl.BlockSpec((1, k_eff, d_pad), lambda i, r: (r, 0, 0)),  # fused weights
        pl.BlockSpec((1, 1, d_pad), lambda i, r: (r, 0, 0)),      # fused bias
    ]
    args = [x_pad, packed["w"], packed["b"]]
    if has_lateral:
        lat_w = lat_stack.shape[-1]
        in_specs.append(pl.BlockSpec((1, tb, lat_w), lambda i, r: (r, i, 0)))
        args.append(lat_stack)
        kernel = _column_lateral_kernel
    else:
        kernel = _column_kernel

    out = pl.pallas_call(
        kernel,
        out_shape=jax.ShapeDtypeStruct((num_rows, b_pad, d_pad), jnp.float32),
        grid_spec=pltpu.PrefetchScalarGridSpec(
            num_scalar_prefetch=0,
            grid=(b_pad // tb, num_rows),
            in_specs=in_specs,
            out_specs=pl.BlockSpec((1, tb, d_pad), lambda i, r: (r, i, 0)),
            scratch_shapes=[pltpu.VMEM((tb, d_pad), jnp.float32)],
        ),
        compiler_params=pltpu.CompilerParams(
            dimension_semantics=("parallel", "arbitrary")),
    )(*args)

    outputs = [out[r, :batch, :layer_sizes[r + 1]] for r in range(num_rows)]
    return outputs[-1], outputs


def prog_column_forward_ref(x, params, parent_last_outputs,
                            compute_dtype=jnp.bfloat16):
    """Plain-JAX reference mirroring the kernel's dtype handling
    (bf16 matmul inputs, f32 accumulation / bias / ReLU)."""
    outputs = []
    num_parents = len(parent_last_outputs)
    h = x
    for row, p in enumerate(params):
        acc = jnp.dot(h.astype(compute_dtype), p["w"].astype(compute_dtype),
                      preferred_element_type=jnp.float32) + p["b"]
        if row > 0 and num_parents >= 1 and p.get("u") is not None:
            for c in range(num_parents):
                acc = acc + jnp.dot(
                    parent_last_outputs[c][row - 1].astype(compute_dtype),
                    p["u"][c].astype(compute_dtype),
                    preferred_element_type=jnp.float32) + p["ub"][c]
        y = jnp.maximum(acc, 0.0)
        outputs.append(y)
        h = y
    return outputs[-1], outputs


# ----------------------------------------------------------------------------
# Deterministic parameter construction
# ----------------------------------------------------------------------------
def make_params(key, layer_sizes, num_parents):
    params = []
    for r in range(len(layer_sizes) - 1):
        din, dout = layer_sizes[r], layer_sizes[r + 1]
        key, kw, kb, ku, kub = jax.random.split(key, 5)
        w = jax.random.normal(kw, (din, dout), jnp.float32) * 0.1
        b = jax.random.normal(kb, (1, dout), jnp.float32) * 0.1
        if r > 0 and num_parents > 0:
            u = jax.random.normal(ku, (num_parents, din, dout), jnp.float32) * 0.1
            ub = jax.random.normal(kub, (num_parents, 1, dout), jnp.float32) * 0.1
        else:
            u, ub = None, None
        params.append({"w": w, "b": b, "u": u, "ub": ub})
    return params


# TODO(synk): freeze()/requires_grad bookkeeping is training-time state with no
# forward-pass Pallas equivalent; only the forward math is implemented here.

if __name__ == "__main__":
    B = 8
    layer_sizes = [32, 64, 64, 32]   # 3 rows of dense blocks
    num_parents = 1

    key = jax.random.PRNGKey(0)
    key, kx = jax.random.split(key)
    x = jax.random.normal(kx, (B, layer_sizes[0]), jnp.float32)

    params = make_params(key, layer_sizes, num_parents)

    # Parent columns' stored lastOutputList (deterministic, ReLU-range values).
    parent_last_outputs = []
    pkey = jax.random.PRNGKey(1)
    for c in range(num_parents):
        outs = []
        for r in range(len(layer_sizes) - 1):
            pkey, k = jax.random.split(pkey)
            outs.append(jnp.maximum(
                jax.random.normal(k, (B, layer_sizes[r + 1]), jnp.float32), 0.0))
        parent_last_outputs.append(outs)

    # One-time packing (would be reused across forward calls / steps).
    packed = pack_column_params(params, layer_sizes, num_parents)
    lat_stack = pack_laterals(parent_last_outputs, packed, B)

    y, last_output_list = prog_column_forward(x, packed, lat_stack)
    y = jax.block_until_ready(y)

    y_ref, outs_ref = prog_column_forward_ref(x, params, parent_last_outputs)
    assert y.shape == (B, layer_sizes[-1])
    for got, ref in zip(last_output_list, outs_ref):
        assert got.shape == ref.shape
        assert jnp.allclose(got, ref, atol=5e-3, rtol=5e-3), (
            float(jnp.max(jnp.abs(got - ref))))

    print("KERNEL_OK")
</pallas_src>

<mosaic_0001>
module attributes {stable_mosaic.version = 11 : i64} {
  func.func @_column_lateral_kernel(%arg0: i32, %arg1: i32, %arg2: memref<8x128xf32, #tpu.memory_space<vmem>>, %arg3: memref<1x256x128xbf16, #tpu.memory_space<vmem>>, %arg4: memref<1x1x128xf32, #tpu.memory_space<vmem>>, %arg5: memref<1x8x128xbf16, #tpu.memory_space<vmem>>, %arg6: memref<1x8x128xf32, #tpu.memory_space<vmem>>, %arg7: memref<8x128xf32, #tpu.memory_space<vmem>>) attributes {dimension_semantics = [#tpu.dimension_semantics<parallel>, #tpu.dimension_semantics<arbitrary>], iteration_bounds = array<i64: 1, 3>, scalar_prefetch = 0 : i64, scratch_operands = 1 : i64, tpu.core_type = #tpu.core_type<tc>, window_params = [{transform_indices = @transform_0, window_bounds = array<i64: 8, 128>}, {transform_indices = @transform_1, window_bounds = array<i64: 1, 256, 128>}, {transform_indices = @transform_2, window_bounds = array<i64: 1, 1, 128>}, {transform_indices = @transform_3, window_bounds = array<i64: 1, 8, 128>}, {transform_indices = @transform_4, window_bounds = array<i64: 1, 8, 128>}]} {
    %c0_i32 = arith.constant 0 : i32
    %0 = arith.cmpi eq, %arg1, %c0_i32 : i32
    %1 = arith.extui %0 : i1 to i32
    %c0_i32_0 = arith.constant 0 : i32
    %2 = arith.cmpi ne, %1, %c0_i32_0 : i32
    scf.if %2 {
      %c0_17 = arith.constant 0 : index
      %c0_18 = arith.constant 0 : index
      %21 = vector.load %arg2[%c0_17, %c0_18] : memref<8x128xf32, #tpu.memory_space<vmem>>, vector<8x128xf32>
      %c0_19 = arith.constant 0 : index
      %c0_20 = arith.constant 0 : index
      %22 = vector.load %arg7[%c0_19, %c0_20] : memref<8x128xf32, #tpu.memory_space<vmem>>, vector<8x128xf32>
      tpu.vector_store %arg7[%c0_19, %c0_20], %21 {strides = array<i32>} : memref<8x128xf32, #tpu.memory_space<vmem>>, vector<8x128xf32>,
    } else {
    }
    %c0 = arith.constant 0 : index
    %c0_1 = arith.constant 0 : index
    %3 = vector.load %arg7[%c0, %c0_1] : memref<8x128xf32, #tpu.memory_space<vmem>>, vector<8x128xf32>
    %4 = arith.truncf %3 : vector<8x128xf32> to vector<8x128xbf16>
    %c0_2 = arith.constant 0 : index
    %c0_3 = arith.constant 0 : index
    %c0_4 = arith.constant 0 : index
    %5 = vector.load %arg5[%c0_2, %c0_3, %c0_4] : memref<1x8x128xbf16, #tpu.memory_space<vmem>>, vector<1x8x128xbf16>
    %6 = vector.shape_cast %5 : vector<1x8x128xbf16> to vector<8x128xbf16>
    %7 = tpu.concatenate %4, %6 in 1 : vector<8x128xbf16>, vector<8x128xbf16> -> vector<8x256xbf16>
    %c0_5 = arith.constant 0 : index
    %c0_6 = arith.constant 0 : index
    %c0_7 = arith.constant 0 : index
    %8 = vector.load %arg3[%c0_5, %c0_6, %c0_7] : memref<1x256x128xbf16, #tpu.memory_space<vmem>>, vector<1x256x128xbf16>
    %9 = vector.shape_cast %8 : vector<1x256x128xbf16> to vector<256x128xbf16>
    %cst = arith.constant dense<0.000000e+00> : vector<8x128xf32>
    %10 = tpu.matmul %7, %9, %cst {dimension_numbers = #tpu.dot_dimension_numbers<[1], [0], [0], [1], [0, 0, 1, 1], [], []>} : vector<8x256xbf16>, vector<256x128xbf16>, vector<8x128xf32> -> vector<8x128xf32>
    %c0_8 = arith.constant 0 : index
    %c0_9 = arith.constant 0 : index
    %c0_10 = arith.constant 0 : index
    %11 = vector.load %arg4[%c0_8, %c0_9, %c0_10] : memref<1x1x128xf32, #tpu.memory_space<vmem>>, vector<1x1x128xf32>
    %12 = vector.shape_cast %11 : vector<1x1x128xf32> to vector<1x128xf32>
    %13 = vector.broadcast %12 : vector<1x128xf32> to vector<8x128xf32>
    %14 = arith.addf %10, %13 : vector<8x128xf32>
    %cst_11 = arith.constant 0.000000e+00 : f32
    %15 = vector.broadcast %cst_11 : f32 to vector<8x128xf32>
    %16 = arith.maximumf %14, %15 : vector<8x128xf32>
    %c0_12 = arith.constant 0 : index
    %c0_13 = arith.constant 0 : index
    %c0_14 = arith.constant 0 : index
    %17 = vector.load %arg6[%c0_12, %c0_13, %c0_14] : memref<1x8x128xf32, #tpu.memory_space<vmem>>, vector<1x8x128xf32>
    %18 = vector.shape_cast %17 : vector<1x8x128xf32> to vector<8x128xf32>
    %19 = vector.shape_cast %16 : vector<8x128xf32> to vector<1x8x128xf32>
    tpu.vector_store %arg6[%c0_12, %c0_13, %c0_14], %19 {strides = array<i32>} : memref<1x8x128xf32, #tpu.memory_space<vmem>>, vector<1x8x128xf32>,
    %c0_15 = arith.constant 0 : index
    %c0_16 = arith.constant 0 : index
    %20 = vector.load %arg7[%c0_15, %c0_16] : memref<8x128xf32, #tpu.memory_space<vmem>>, vector<8x128xf32>
    tpu.vector_store %arg7[%c0_15, %c0_16], %16 {strides = array<i32>} : memref<8x128xf32, #tpu.memory_space<vmem>>, vector<8x128xf32>,
    return
  }
  func.func @transform_0(%arg0: i32, %arg1: i32) -> (i32, i32) {
    %c0_i32 = arith.constant 0 : i32
    %c0_i32_0 = arith.constant 0 : i32
    return %arg0, %c0_i32 : i32, i32
  }
  func.func @transform_1(%arg0: i32, %arg1: i32) -> (i32, i32, i32) {
    %c0_i32 = arith.constant 0 : i32
    %c0_i32_0 = arith.constant 0 : i32
    %c0_i32_1 = arith.constant 0 : i32
    return %arg1, %c0_i32, %c0_i32_0 : i32, i32, i32
  }
  func.func @transform_2(%arg0: i32, %arg1: i32) -> (i32, i32, i32) {
    %c0_i32 = arith.constant 0 : i32
    %c0_i32_0 = arith.constant 0 : i32
    %c0_i32_1 = arith.constant 0 : i32
    return %arg1, %c0_i32, %c0_i32_0 : i32, i32, i32
  }
  func.func @transform_3(%arg0: i32, %arg1: i32) -> (i32, i32, i32) {
    %c0_i32 = arith.constant 0 : i32
    %c0_i32_0 = arith.constant 0 : i32
    return %arg1, %arg0, %c0_i32 : i32, i32, i32
  }
  func.func @transform_4(%arg0: i32, %arg1: i32) -> (i32, i32, i32) {
    %c0_i32 = arith.constant 0 : i32
    %c0_i32_0 = arith.constant 0 : i32
    return %arg1, %arg0, %c0_i32 : i32, i32, i32
  }
}

</mosaic_0001>

<bundles_post_ra>
// kernel: tpu_custom_call.1
= control target key start
LH: loop header
LB: loop body
LE: loop exit
PB: predicated region body
PF: predicated region fallthrough
CT: control target
= control target key end

     0   :  { %s1274_s0 = inlined_call_operand.hbm [shape: f32[8,128], index: 0, kind: input, shape index: {}]   ;;  %s1275_s1 = inlined_call_operand.hbm [shape: bf16[3,256,128], index: 1, kind: input, shape index: {}]   ;;  %s1276_s2 = inlined_call_operand.vmem [shape: f32[3,1,128], index: 2, kind: input, shape index: {}]   ;;  %s1277_s3 = inlined_call_operand.hbm [shape: bf16[3,8,128], index: 3, kind: input, shape index: {}]   ;;  %s1278_s4 = inlined_call_operand.hbm [shape: f32[3,8,128], index: 4, kind: output, shape index: {}]  }
   0x1   :  { %1288 = sst [smem:[#allocation15_spill]] %s1275_s1 }
   0x2   :  { %9 = vsyncpa [#allocation4], 0 }
   0x3   :  { %10 = vsyncpa [#allocation7], 0 }
   0x4   :  { %12 = vsyncpa [#allocation7 + $0x1], 0 }
   0x5   :  { %13 = vsyncpa [#allocation5], 0 }
   0x6   :  { %15 = vsyncpa [#allocation5 + $0x1], 0  ;;  %s990_s15 = smov 0   ;;  %s992_s16 = smov 0  }
   0x7   :  { %s994_s17 = smov 0   ;;  %s996_s18 = smov 0  }
   0x8   :  { %s998_s19 = smov 0   ;;  %s1000_s20 = smov 0  }
   0x9 LB: > { %1289 = sst [smem:[#allocation13_spill]] %s953_s19  ;;  %s30_s21 = sadd.s32 1, %s953_s19  ;;  %s957_s20 = sphi %s1000_s20, %s21_s20   ;;  %s953_s19 = sphi %s998_s19, %s1308_s19   ;;  %s949_s18 = sphi %s996_s18, %s1307_s18   ;;  %s945_s17 = sphi %s994_s17, %s1311_s17   ;;  %s941_s16 = sphi %s992_s16, %s1310_s16   ;;  %s937_s15 = sphi %s990_s15, %s1309_s15  }
   0xa   : > { %s66_s22 = sadd.s32 1, %s945_s17  ;;  %p31_p0 = scmp.ge.s32.totalorder %s30_s21, 3 }
   0xb   : > { %p73_p1 = scmp.ne.s32.totalorder %s945_s17, %s941_s16  ;;  %p74_p2 = scmp.eq.s32.totalorder %s957_s20, 0 }
   0xc   : > { %s1313_s21 = smov (%p31_p0, %s30_s21), 0  ;;  %p713_p4 = scmp.lt.s32.totalorder %s957_s20, 3 }
   0xd   : > { %1290 = sst [smem:[#allocation14_spill]] %s1313_s21  ;;  %p75_p3 = por %p74_p2, %p73_p1 }
   0xe   : > { %s63_s23 = ssub.s32 %s953_s19, %s1313_s21  ;;  %s198_s24 = sand.u32 1, %s957_s20  }
   0xf   : > { %p64_p5 = scmp.eq.s32.totalorder %s63_s23, 0  ;;  %s200_s25 = sand.u32 1, %s945_s17  }
  0x10   : > { %s664_s26 = sshll.u32 %s953_s19, 11  ;;  %s632_s28 = sshll.u32 %s200_s25, 7 }
  0x11   : > { %s1037_s27 = scalar_select %p64_p5, %s945_s17, %s66_s22  }
  0x12   : > { %s1291_s1 = sld [smem:[#allocation15_spill]]  ;;  %p1046_p6 = pnand %p713_p4, %p75_p3 }
  0x13   : > { %s202_s7 = scalar_lea.vmem [#allocation6], %s632_s28  ;;  %s1052_s9 = scalar_lea.sflag [#allocation7], %s198_s24 }
  0x14   : > { %s1292_s6 = scalar_select %p1046_p6, 1, 0 }
  0x15   : > { %s209_s8 = sshll.u32 %s202_s7, 4  ;;  %p1282_p8 = pneg %p1046_p6  ;;  %s1050_s8 = int_to_ptr.vmem [resolvable:$true] %s209_s8 }
  0x18   : > { %s1044_s5 = scalar_lea.hbm %s1291_s1, %s664_s26  ;;  %s788_s13 = scalar_lea.hbm %s1291_s1, 6144 }
  0x19   : > { %s783_s10 = scalar_lea.hbm %s1044_s5, 2048  ;;  %p789_p11 = scmp.lt.u32.totalorder %s1044_s5, %s1291_s1 }
  0x1a   : > { %p784_p7 = scmp.ne.s32.totalorder %s1044_s5, %s783_s10  ;;  %p790_p12 = scmp.lt.u32.totalorder %s788_s13, %s783_s10 }
  0x1b   : > { %p792_p0 = scmp.lt.u32.totalorder %s783_s10, %s1044_s5 }
  0x1c   : > { %p786_p9 = pnand %p1282_p8, %p784_p7  ;;  %p791_p13 = por %p790_p12, %p789_p11 }
  0x1e   : > { %p787_p10 = pneg %p786_p9  ;;  %p793_p2 = por %p792_p0, %p791_p13 }
  0x20   : > { %p794_p3 = pnand %p793_p2, %p787_p10 }
  0x22   : > { %797 = shalt.err (!%p794_p3)
}
  0x23   : > { %s798_s23 = scalar_lea.vmem %s1050_s8, 2048  ;;  %s959_s24 = smov [#allocation6]  }
  0x24   : > { %p799_p4 = scmp.ne.s32.totalorder %s1050_s8, %s798_s23  ;;  %s803_s26 = sshll.u32 %s959_s24, 4  ;;  %s804_s26 = int_to_ptr.vmem [resolvable:$false] %s803_s26 }
  0x25   : > { %s805_s28 = scalar_lea.vmem %s804_s26, 4096  ;;  %p806_p9 = scmp.lt.s32.totalorder %s1050_s8, %s804_s26 }
  0x26   : > { %p801_p5 = pnand %p799_p4, %p1282_p8  ;;  %p807_p11 = scmp.lt.s32.totalorder %s805_s28, %s798_s23 }
  0x28   : > { %p802_p7 = pneg %p801_p5  ;;  %p808_p12 = por %p807_p11, %p806_p9 }
  0x2a   : > { %p809_p13 = pnand %p808_p12, %p802_p7 }
  0x2c   : > { %812 = shalt.err (!%p809_p13)
}
  0x2d   : > { %s960_s29 = smov 64   ;;  %s961_s30 = smov 4  }
  0x2e   : > { %704 = dma.hbm_to_vmem [thread:$0]  (!%p1046_p6), %s1044_s5, 2048, %s1050_s8, %s1052_s9, %s960_s29, %s960_s29, %s961_s30  }
  0x2f   : > { %s1081_s7 = sadd.s32 4294967295, %s957_s20   ;;  %s628_s10 = sadd.s32 4294967294, %s957_s20  }
  0x30   : > { %p79_p10 = scmp.ne.s32.totalorder %s941_s16, %s937_s15  ;;  %p1281_p0 = scmp.eq.s32.totalorder %s1081_s7, 0 }
  0x31   : > { %p159_p2 = scmp.eq.s32.totalorder %s1081_s7, 2  ;;  %p165_p3 = scmp.eq.s32.totalorder %s628_s10, 2 }
  0x32   : > { %p629_p4 = scmp.ge.s32.totalorder %s957_s20, 1  ;;  %p1091_p5 = por %p1281_p0, %p79_p10 }
  0x33   : > { %p1098_p7 = por %p159_p2, %p73_p1  ;;  %p1102_p9 = por %p165_p3, %p79_p10 }
  0x34   : > { %s1293_s11 = scalar_select %p1091_p5, 1, 0 }
  0x35   : > { %s1294_s5 = scalar_select %p1098_p7, 1, 0 }
  0x36   : > { %s1295_s8 = scalar_select %p1102_p9, 1, 0 }
  0x37   : > { %p172_p11 = scmp.lt.s32.totalorder %s957_s20, 4  ;;  %s962_s13 = smov [#allocation3]  }
  0x38   : > { %s187_s14 = sshll.u32 %s962_s13, 4  ;;  %s635_s22 = sshll.u32 %s200_s25, 2  ;;  %s188_s14 = int_to_ptr.vmem [resolvable:$true] %s187_s14 }
  0x39   : > { %p1107_p12 = pnand %p629_p4, %p172_p11  ;;  %s636_s23 = sshll.u32 %s953_s19, 6 }
  0x3a   : > { %s229_s24 = scalar_lea.vmem [#allocation8], %s635_s22  ;;  %s1125_s10 = scalar_lea.hbm %s1277_s3, %s636_s23 }
  0x3b   : > { %s1296_s12 = scalar_select %p1107_p12, 1, 0 }
  0x3c   : > { %p697_p13 = pneg %p1107_p12  ;;  %s237_s26 = sshll.u32 %s229_s24, 4  ;;  %s1127_s26 = int_to_ptr.vmem [resolvable:$true] %s237_s26 }
  0x3d   : > { %s813_s1 = scalar_lea.hbm %s1274_s0, 128 }
  0x3e   : > { %p1118_p1 = pnand %p697_p13, %p1281_p0  ;;  %p814_p10 = scmp.ne.s32.totalorder %s1274_s0, %s813_s1 }
  0x3f   : > { %p820_p11 = scmp.lt.u32.totalorder %s813_s1, %s1274_s0 }
  0x40   : > { %p815_p2 = pneg %p1118_p1 }
  0x42   : > { %p816_p3 = pnand %p815_p2, %p814_p10 }
  0x44   : > { %p817_p4 = pneg %p816_p3 }
  0x46   : > { %p822_p13 = pnand %p820_p11, %p817_p4 }
  0x48   : > { %825 = shalt.err (!%p822_p13)
}
  0x49   : > { %s826_s23 = scalar_lea.vmem %s188_s14, 128  ;;  %p834_p7 = scmp.lt.s32.totalorder %s188_s14, %s188_s14 }
  0x4a   : > { %p827_p0 = scmp.ne.s32.totalorder %s188_s14, %s826_s23  ;;  %p835_p5 = scmp.lt.s32.totalorder %s826_s23, %s826_s23 }
  0x4c   : > { %p829_p8 = pnand %p827_p0, %p815_p2  ;;  %p836_p12 = por %p835_p5, %p834_p7 }
  0x4e   : > { %p830_p9 = pneg %p829_p8 }
  0x50   : > { %p837_p6 = pnand %p836_p12, %p830_p9 }
  0x52   : > { %840 = shalt.err (!%p837_p6)
}
  0x53   : > { %700 = dma.hbm_to_vmem [thread:$0]  (!%p1118_p1), %s1274_s0, 128, %s188_s14, [#allocation4]  }
  0x54   : > { %s841_s1 = scalar_lea.hbm %s1125_s10, 64  ;;  %p1298_p0 = scmp.ne.s32.totalorder %s1292_s6, 0 }
  0x55   : > { %p842_p10 = scmp.ne.s32.totalorder %s1125_s10, %s841_s1  ;;  %s846_s25 = scalar_lea.hbm %s1277_s3, 192 }
  0x56   : > { %p1299_p8 = pneg %p1298_p0  ;;  %p847_p6 = scmp.lt.u32.totalorder %s1125_s10, %s1277_s3 }
  0x57   : > { %p848_p5 = scmp.lt.u32.totalorder %s846_s25, %s841_s1  ;;  %p850_p9 = scmp.lt.u32.totalorder %s841_s1, %s1125_s10 }
  0x58   : > { %p844_p2 = pnand %p842_p10, %p1299_p8 }
  0x59   : > { %p849_p7 = por %p848_p5, %p847_p6 }
  0x5a   : > { %p845_p3 = pneg %p844_p2 }
  0x5b   : > { %p851_p12 = por %p850_p9, %p849_p7 }
  0x5d   : > { %p852_p4 = pnand %p851_p12, %p845_p3 }
  0x5f   : > { %855 = shalt.err (!%p852_p4)
}
  0x60   : > { %s856_s14 = scalar_lea.vmem %s1127_s26, 64  ;;  %p1300_p11 = pmov %p1299_p8 }
  0x61   : > { %p857_p1 = scmp.ne.s32.totalorder %s1127_s26, %s856_s14  ;;  %s963_s22 = smov [#allocation8]  }
  0x62   : > { %s861_s24 = sshll.u32 %s963_s22, 4  ;;  %s862_s24 = int_to_ptr.vmem [resolvable:$false] %s861_s24 }
  0x63   : > { %p859_p13 = pnand %p857_p1, %p1300_p11  ;;  %s863_s23 = scalar_lea.vmem %s862_s24, 128 }
  0x64   : > { %p864_p8 = scmp.lt.s32.totalorder %s1127_s26, %s862_s24  ;;  %p865_p2 = scmp.lt.s32.totalorder %s863_s23, %s856_s14 }
  0x65   : > { %p860_p10 = pneg %p859_p13 }
  0x66   : > { %p866_p6 = por %p865_p2, %p864_p8 }
  0x68   : > { %p867_p5 = pnand %p866_p6, %p860_p10 }
  0x6a   : > { %870 = shalt.err (!%p867_p5)
}
  0x6b   : > { %707 = dma.hbm_to_vmem [thread:$0]  (!%p1298_p0), %s1125_s10, 64, %s1127_s26, %s1052_s9  }
  0x6c   : > { %p1301_p3 = scmp.ne.s32.totalorder %s1296_s12, 0 }
  0x6d   : > { %p1302_p7 = scmp.eq.s32.totalorder (!%p1301_p3), %s1081_s7, 0 }
  0x6e   : > { %246 = sbr.rel (%p1301_p3) target bundleno = 400 (0x190), region = 36 }
  0x75   : > { %924 = dma.done.wait (%p1302_p7), [#allocation4], 128   ;;  %p1303_p9 = pmov %p1302_p7 }
  0x76   : > { %s252_s29 = sand.u32 1, %s1081_s7   ;;  %s1177_s30 = sand.u32 1, %s941_s16  }
  0x77   : > { %926 = vsyncadd (%p1303_p9), [#allocation4], 4294967168  ;;  %s639_s6 = sshll.u32 %s1177_s30, 7  ;;  %s253_s1 = scalar_lea.sflag [#allocation7], %s252_s29 }
  0x78   : > { %s1180_s19 = scalar_lea.vmem [#allocation6], %s639_s6  ;;  %p1304_p0 = scmp.ne.s32.totalorder %s1293_s11, 0 }
  0x7a   : > { %928 = dma.done.wait (%p1304_p0), %s253_s1, 2112  }
  0x7b   : > { %930 = vsyncadd (%p1304_p0), %s253_s1, 4294965184  ;;  %s640_s9 = sshll.u32 %s1177_s30, 2  ;;  %s641_s12 = sshll.u32 %s1177_s30, 3 }
  0x7c   : > { %p298_p12 = scmp.lt.s32.totalorder %s949_s18, 2  ;;  %s265_s25 = scalar_lea.vmem [#allocation8], %s640_s9 }
  0x7d   : > { %s1196_s28 = scalar_lea.vmem [#allocation9], %s641_s12  ;;  %p642_p4 = scmp.ne.s32.totalorder %s949_s18, 0 }
  0x7e   : > { %s1190_s7 = scalar_select %p298_p12, %s949_s18, 2 }
  0x7f   : > { %305 = sbr.rel (%p642_p4) target bundleno = 134 (0x86), region = 52  ;;  %v306_v0 = vld [vmem:[#allocation3] sm:$0xff] (!%p642_p4) }
  0x80   : > { %s300_s21 = scalar_lea.vmem %s1276_s2, %s1190_s7  ;;  %307 = vst [vmem:[#allocation2] sm:$0xff] (!%p642_p4), %v306_v0 }
  0x86 PF: > { %v767_v1 = vld [vmem:[%s1180_s19 + $0x40] sm:$0xff]   ;;  %v769_v3 = vld [vmem:[%s1180_s19 + $0x48] sm:$0xff]   ;;  %v771_v5 = vld [vmem:[%s1180_s19 + $0x50] sm:$0xff]   ;;  %s661_s14 = sshll.u32 %s949_s18, 7  ;;  %s504_s22 = sshll.u32 %s1196_s28, 4  ;;  %s1227_s22 = int_to_ptr.vmem [resolvable:$true] %s504_s22 }
  0x87   : > { %v768_v2 = vld [vmem:[%s1180_s19] sm:$0xff]   ;;  %665 = vmatprep.subr.bf16.mxu0 %v767_v1  ;;  %v770_v4 = vld [vmem:[%s1180_s19 + $0x8] sm:$0xff]   ;;  %v772_v6 = vld [vmem:[%s1180_s19 + $0x10] sm:$0xff]   ;;  %s1225_s29 = scalar_lea.hbm %s1278_s4, %s661_s14  ;;  %s490_s6 = scalar_lea.sflag [#allocation5], %s1177_s30 }
  0x88   : > { %666 = vmatpush3.bf16.msra.mxu0 %v768_v2  ;;  %v773_v7 = vld [vmem:[%s1180_s19 + $0x58] sm:$0xff]   ;;  %v775_v9 = vld [vmem:[%s1180_s19 + $0x60] sm:$0xff]   ;;  %v777_v11 = vld [vmem:[%s1180_s19 + $0x68] sm:$0xff]   ;;  %s871_s1 = scalar_lea.vmem %s1227_s22, 128  ;;  %p1305_p11 = scmp.ne.s32.totalorder %s1294_s5, 0 }
  0x89   : > { %667 = vmatprep.subr.bf16.mxu0 %v769_v3  ;;  %v774_v8 = vld [vmem:[%s1180_s19 + $0x18] sm:$0xff]   ;;  %v776_v10 = vld [vmem:[%s1180_s19 + $0x20] sm:$0xff]   ;;  %v778_v13 = vld [vmem:[%s1180_s19 + $0x28] sm:$0xff]   ;;  %p872_p1 = scmp.ne.s32.totalorder %s1227_s22, %s871_s1  ;;  %s964_s18 = smov [#allocation9]  }
  0x8a   : > { %v310_v12 = vld [vmem:[%s265_s25] sm:$0xf]  ;;  %v779_v14 = vld [vmem:[%s1180_s19 + $0x70] sm:$0xff]   ;;  %v781_v16 = vld [vmem:[%s1180_s19 + $0x78] sm:$0xff]  }
  0x8b   : > { %478 = vmatprep.mubr.bf16.mxu0 %v310_v12  ;;  %v780_v15 = vld [vmem:[%s1180_s19 + $0x30] sm:$0xff]   ;;  %v782_v17 = vld [vmem:[%s1180_s19 + $0x38] sm:$0xff]   ;;  %p873_p13 = pnand %p872_p1, %p1305_p11  ;;  %s875_s19 = sshll.u32 %s964_s18, 4  ;;  %s876_s19 = int_to_ptr.vmem [resolvable:$false] %s875_s19 }
  0x8c   : > { %668 = vmatpush3.bf16.msra.mxu0 %v770_v4  ;;  %v308_v18 = vld [vmem:[#allocation2] sm:$0xff]  ;;  %s877_s9 = scalar_lea.vmem %s876_s19, 256  ;;  %p878_p8 = scmp.lt.s32.totalorder %s1227_s22, %s876_s19 }
  0x8d   : > { %669 = vmatprep.subr.bf16.mxu0 %v771_v5  ;;  %v309_v19 = vpack.c.bf16 %v308_v18, %v308_v18  ;;  %v643_v21 = vld [vmem:[%s300_s21] ss:$0 sm:$0xff]  ;;  %p874_p10 = pneg %p873_p13  ;;  %p879_p2 = scmp.lt.s32.totalorder %s877_s9, %s871_s1 }
  0x8f   : > { %p880_p6 = por %p879_p2, %p878_p8 }
  0x90   : > { %670 = vmatpush3.bf16.msra.mxu0 %v772_v6 }
  0x91   : > { %671 = vmatprep.subr.bf16.mxu0 %v773_v7  ;;  %p881_p5 = pnand %p880_p6, %p874_p10 }
  0x94   : > { %672 = vmatpush3.bf16.msra.mxu0 %v774_v8 }
  0x95   : > { %673 = vmatprep.subr.bf16.mxu0 %v775_v9 }
  0x98   : > { %674 = vmatpush3.bf16.msra.mxu0 %v776_v10 }
  0x99   : > { %675 = vmatprep.subr.bf16.mxu0 %v777_v11 }
  0x9c   : > { %676 = vmatpush3.bf16.msra.mxu0 %v778_v13 }
  0x9d   : > { %677 = vmatprep.subr.bf16.mxu0 %v779_v14 }
  0xa0   : > { %678 = vmatpush3.bf16.msra.mxu0 %v780_v15 }
  0xa1   : > { %679 = vmatprep.subr.bf16.mxu0 %v781_v16 }
  0xa4   : > { %680 = vmatpush3.bf16.msra.mxu0 %v782_v17 }
  0xa7   : > { %479 = vmatmul.mubr.bf16.vlgmr.msra.gmra.mrb[0].mxu0 %v309_v19 }
 0x17a   : > { %v681_v20 = vpop.f32.mrb[0].mxu0 }
 0x17b   : > { %v682_v22 = vpop.f32.mrb[1].mxu0 }
 0x17c   : > { %v683_v23 = vadd.f32 %v682_v22, %v681_v20  ;;  %v684_v24 = vpop.f32.mrb[2].mxu0 }
 0x17d   : > { %v685_v25 = vpop.f32.mrb[3].mxu0 }
 0x17e   : > { %v481_v26 = vadd.f32 %v683_v23, %v643_v21 }
 0x180   : > { %v486_v27 = vmax.f32 %v481_v26, 0.0 }
 0x182   : > { %488 = vst [vmem:[#allocation2] sm:$0xff] %v486_v27  ;;  %487 = vst [vmem:[%s1196_s28] sm:$0xff] %v486_v27 }
 0x183   : > { %884 = shalt.err (!%p881_p5)
}
 0x184   : > { %s885_s30 = scalar_lea.hbm %s1225_s29, 128  ;;  %s889_s26 = scalar_lea.hbm %s1278_s4, 384 }
 0x185   : > { %p886_p3 = scmp.ne.s32.totalorder %s1225_s29, %s885_s30  ;;  %p890_p0 = scmp.lt.u32.totalorder %s1225_s29, %s1278_s4 }
 0x186   : > { %p891_p12 = scmp.lt.u32.totalorder %s889_s26, %s885_s30  ;;  %p893_p1 = scmp.lt.u32.totalorder %s885_s30, %s1225_s29 }
 0x187   : > { %p887_p7 = pnand %p886_p3, %p1305_p11 }
 0x188   : > { %p892_p4 = por %p891_p12, %p890_p0 }
 0x189   : > { %p888_p9 = pneg %p887_p7 }
 0x18a   : > { %p894_p13 = por %p893_p1, %p892_p4 }
 0x18c   : > { %p895_p10 = pnand %p894_p13, %p888_p9 }
 0x18e   : > { %898 = shalt.err (!%p895_p10)
}
 0x18f   : > { %695 = dma.vmem_to_hbm [thread:$0]  (%p1305_p11), %s1227_s22, 128, %s1225_s29, %s490_s6  }
 0x190 PF: > { %p715_p8 = scmp.ge.s32.totalorder %s957_s20, 2  ;;  %s516_s25 = sand.u32 1, %s937_s15  }
 0x191   : > { %p1306_p2 = scmp.ne.s32.totalorder %s1295_s8, 0  ;;  %s517_s28 = scalar_lea.sflag [#allocation5], %s516_s25 }
 0x193   : > { %p709_p6 = pnand %p715_p8, %p1306_p2 }
 0x195   : > { %932 = dma.done.wait (!%p709_p6), %s517_s28, 128  }
 0x196   : > { %934 = vsyncadd (!%p709_p6), %s517_s28, 4294967168  ;;  %s21_s20 = sadd.s32 1, %s957_s20   ;;  %s1307_s18 = sld [smem:[#allocation13_spill]] }
 0x197   : > { %p18_p5 = scmp.ge.s32.totalorder %s21_s20, 5   ;;  %s1308_s19 = sld [smem:[#allocation14_spill]] }
 0x198   : > { %s1309_s15 = smov %s941_s16  ;;  %s1310_s16 = smov %s945_s17 }
 0x199   : > { %s1311_s17 = smov %s1037_s27  ;;  %20 = sbr.rel (!%p18_p5) target bundleno = 9 (0x9), region = 105 }
 0x1a0   :  { %522 = vsyncpa [#allocation4], 1 }
 0x1a1   :  { %524 = vsyncpa [#allocation4 + $0x1], 1 }
 0x1a2   :  { %525 = vsyncpa [#allocation7], 1 }
 0x1a3   :  { %527 = vsyncpa [#allocation7 + $0x1], 1 }
 0x1a4   :  { %528 = vsyncpa [#allocation5], 1 }
 0x1a5   :  { %530 = vsyncpa [#allocation5 + $0x1], 1 }

</bundles_post_ra>
